<compile_context>
chip_gen: v6e
topology: v6e:2x2x1
jax: 0.10.0
libtpu: 0.0.40
codegen_flags: <defaults>
</compile_context>

<pallas_src>
from functools import partial

import jax
import jax.numpy as jnp
from jax.experimental import pallas as pl
from jax.experimental.pallas import tpu as pltpu


def _round_up(x, m):
    return ((x + m - 1) // m) * m


# ----------------------------- Pallas kernel ------------------------------ #
def _drconv_kernel(filt_ref, patch_ref, out_ref, *, R, Cout, guide_off):
    """One (batch, HW-tile) grid step.

    filt_ref : (1, Np, Kc)    bf16  packed [dynamic filters | pad | guide filters(+bias col)]
    patch_ref: (1, Kc, hw)    bf16  im2col patch tile (+ ones row for the bias)
    out_ref  : (1, Cout, hw)  f32
    """
    hw = patch_ref.shape[-1]

    # Single bf16 MXU matmul with f32 accumulation: region-wise correlation conv
    # (rows [0, R*Cout)) and biased guide conv (rows [guide_off, guide_off+R)).
    acc = jnp.dot(filt_ref[0], patch_ref[0],
                  preferred_element_type=jnp.float32)            # (Np, hw)

    guide = acc[guide_off:guide_off + R, :]                      # (R, hw), bias folded in

    # argmax over regions (first-max index, torch semantics); pixels stay on lanes.
    gmax = jnp.max(guide, axis=0, keepdims=True)                 # (1, hw)
    riota = jax.lax.broadcasted_iota(jnp.int32, (R, hw), 0)
    idx = jnp.min(jnp.where(guide >= gmax, riota, R),
                  axis=0, keepdims=True)                         # (1, hw) int32

    # Unrolled region loop: accumulate the selected region's conv rows into a
    # single (Cout, hw) buffer (static 8-aligned slices of acc -> free views).
    out = jnp.zeros((Cout, hw), jnp.float32)
    for r in range(R):
        conv_r = acc[r * Cout:(r + 1) * Cout, :]                 # (Cout, hw)
        out = out + jnp.where(idx == r, conv_r, 0.0)

    out_ref[...] = out[None].astype(out_ref.dtype)


def drconv_pallas(filt_all, patchT, *, R, Cout, guide_off, hw_tile):
    B, Np, Kc = filt_all.shape
    _, _, HWp = patchT.shape
    assert HWp % hw_tile == 0
    n_tiles = HWp // hw_tile

    # VMEM budget: double-buffered input/output blocks + f32 acc + epilogue temps.
    block_bytes = 2 * (Np * Kc * 2 + Kc * hw_tile * 2 + Cout * hw_tile * 4)
    acc_bytes = Np * hw_tile * 4
    vmem_limit = int(min(64 << 20, max(16 << 20, 4 * (block_bytes + acc_bytes))))

    cost = pl.CostEstimate(
        flops=int(2 * B * Np * Kc * HWp),
        transcendentals=0,
        bytes_accessed=int(filt_all.size * 2 + patchT.size * 2 + B * Cout * HWp * 4))

    kern = partial(_drconv_kernel, R=R, Cout=Cout, guide_off=guide_off)
    return pl.pallas_call(
        kern,
        out_shape=jax.ShapeDtypeStruct((B, Cout, HWp), jnp.float32),
        grid_spec=pltpu.PrefetchScalarGridSpec(
            num_scalar_prefetch=0,
            grid=(B, n_tiles),                       # b outer -> filt block stays resident over t
            in_specs=[
                pl.BlockSpec((1, Np, Kc), lambda b, t: (b, 0, 0)),
                pl.BlockSpec((1, Kc, hw_tile), lambda b, t: (b, 0, t)),
            ],
            out_specs=pl.BlockSpec((1, Cout, hw_tile), lambda b, t: (b, 0, t)),
        ),
        compiler_params=pltpu.CompilerParams(
            dimension_semantics=("parallel", "parallel"),
            vmem_limit_bytes=vmem_limit),
        cost_estimate=cost,
    )(filt_all, patchT)


# ------------------------------ JAX glue ----------------------------------- #
def adaptive_avg_pool2d(x, out_h, out_w):
    """PyTorch-style AdaptiveAvgPool2d on NCHW input."""
    B, C, H, W = x.shape
    rows = []
    for i in range(out_h):
        hs, he = (i * H) // out_h, -((-(i + 1) * H) // out_h)
        cols = []
        for j in range(out_w):
            ws, we = (j * W) // out_w, -((-(j + 1) * W) // out_w)
            cols.append(jnp.mean(x[:, :, hs:he, ws:we], axis=(2, 3)))
        rows.append(jnp.stack(cols, axis=-1))
    return jnp.stack(rows, axis=-2)                              # (B, C, out_h, out_w)


def drconv2d_forward(x, params, *, K, R, Cout, stride, padding, hw_tile=2048):
    """x: NCHW (B, Cin, H, W), same as the PyTorch module. Returns NCHW output."""
    B, Cin, H, W = x.shape
    w1, b1, w2, b2, wg, bg = params

    # ---- conv_kernel branch: dynamic filter generator (tiny; plain JAX) ----
    pooled = adaptive_avg_pool2d(x, K, K)                                  # (B,Cin,K,K)
    y1 = jnp.einsum('bchw,oc->bohw', pooled, w1) + b1[None, :, None, None]
    y1 = jax.nn.sigmoid(y1)                                                # (B,R*R,K,K)
    y1g = y1.reshape(B, R, R, K, K)                                        # groups = R
    w2g = w2.reshape(R, Cin * Cout, R)
    ker = jnp.einsum('brjhw,roj->brohw', y1g, w2g)
    ker = ker.reshape(B, R * Cin * Cout, K, K) + b2[None, :, None, None]
    # channel layout (r, co, ci), matching the PyTorch xcorr view(-1, Cin, K, K)
    filt6 = ker.reshape(B, R, Cout, Cin, K, K)

    # ---- packing for the Pallas hot path (bf16 operands, f32 accumulation) ----
    Ho = (H + 2 * padding - K) // stride + 1
    Wo = (W + 2 * padding - K) // stride + 1
    HW, KKC, RCout = Ho * Wo, K * K * Cin, R * Cout

    xc_bf = jnp.pad(x.astype(jnp.bfloat16),
                    ((0, 0), (0, 0), (padding, padding), (padding, padding)))
    filt6_bf = filt6.astype(jnp.bfloat16)
    wg_bf = wg.astype(jnp.bfloat16)
    bg_bf = bg.astype(jnp.bfloat16)

    # im2col straight from padded NCHW (no NHWC convert, no big transposes):
    # rows ordered (kh, kw, ci), cols = flat output pixels (lanes).
    taps = [xc_bf[:, :, kh:kh + (Ho - 1) * stride + 1:stride,
                  kw:kw + (Wo - 1) * stride + 1:stride]
            for kh in range(K) for kw in range(K)]                          # (B,Cin,Ho,Wo)
    patch = jnp.stack(taps, axis=1).reshape(B, KKC, HW)                     # (B,KKC,HW)
    # TODO(synk): build the im2col rows inside the kernel from a halo'd input block
    # to remove the K^2-inflated HBM stream entirely (largest remaining traffic).

    # packed filter rows: [dynamic (r*Cout+co) rows | pad to 8 | guide rows],
    # cols (kh,kw,ci) plus one bias column matched by a ones-row in patchT.
    filt_rows = jnp.transpose(filt6_bf, (0, 1, 2, 4, 5, 3)).reshape(B, RCout, KKC)
    guide_rows = jnp.concatenate(
        [jnp.transpose(wg_bf, (0, 2, 3, 1)).reshape(R, KKC), bg_bf[:, None]], axis=1)
    guide_rows = jnp.broadcast_to(guide_rows[None], (B, R, KKC + 1))

    RCout_pad = _round_up(RCout, 8)          # guide rows start on an 8-sublane boundary
    Kc_pad = _round_up(KKC + 1, 16)          # bf16 sublane multiple; +1 = bias column
    Np = _round_up(RCout_pad + R, 16)
    hw_tile = min(hw_tile, _round_up(HW, 128))
    HWp = _round_up(HW, hw_tile)
    # keep >= 2 grid steps total so 2-TensorCore parts (v7x) never idle a core
    while B * (HWp // hw_tile) < 2 and hw_tile > 128:
        hw_tile = max(128, _round_up(hw_tile // 2, 128))
        HWp = _round_up(HW, hw_tile)

    filt_dyn = jnp.pad(filt_rows, ((0, 0), (0, RCout_pad - RCout), (0, 1)))
    filt_all = jnp.concatenate([filt_dyn, guide_rows], axis=1)              # (B,RCout_pad+R,KKC+1)
    filt_all = jnp.pad(filt_all,
                       ((0, 0), (0, Np - (RCout_pad + R)), (0, Kc_pad - (KKC + 1))))

    ones_row = jnp.ones((B, 1, HW), jnp.bfloat16)                           # bias row
    patchT = jnp.concatenate([patch, ones_row], axis=1)                     # (B,KKC+1,HW)
    patchT = jnp.pad(patchT, ((0, 0), (0, Kc_pad - (KKC + 1)), (0, HWp - HW)))

    out_flat = drconv_pallas(filt_all, patchT, R=R, Cout=Cout,
                             guide_off=RCout_pad, hw_tile=hw_tile)
    out = out_flat[:, :, :HW].reshape(B, Cout, Ho, Wo)    # (B,Cout,Ho*Wo) is NCHW-flat
    return out, (xc_bf, filt6_bf, wg_bf, bg_bf, Ho, Wo)


def reference_drconv(xc, filt6, wg, bg, *, K, Ho, Wo, R, Cout, stride):
    """Pure-JAX reference mirroring the module math on the same (bf16-rounded) inputs."""
    xc = xc.astype(jnp.float32)                      # padded NCHW
    filt6 = filt6.astype(jnp.float32)
    wg = wg.astype(jnp.float32)
    bg = bg.astype(jnp.float32)
    conv = 0.0
    guide = 0.0
    for kh in range(K):
        for kw in range(K):
            patch = xc[:, :, kh:kh + (Ho - 1) * stride + 1:stride,
                       kw:kw + (Wo - 1) * stride + 1:stride]               # (B,Cin,Ho,Wo)
            conv = conv + jnp.einsum('bchw,broc->bhwro', patch,
                                     filt6[:, :, :, :, kh, kw],
                                     precision=jax.lax.Precision.HIGHEST)
            guide = guide + jnp.einsum('bchw,rc->bhwr', patch, wg[:, :, kh, kw],
                                       precision=jax.lax.Precision.HIGHEST)
    guide = guide + bg.reshape(1, 1, 1, R)
    idx = jnp.argmax(guide, axis=-1)
    mask = jax.nn.one_hot(idx, R, dtype=jnp.float32)
    out = jnp.einsum('bhwro,bhwr->bohw', conv, mask)                        # NCHW
    return out, guide


# --------------------------------- main ------------------------------------ #
if __name__ == "__main__":
    B, Cin, H, W = 2, 4, 16, 16
    Cout, K, R = 8, 3, 8
    stride, padding = 1, 1

    key = jax.random.PRNGKey(0)
    k_x, k1, k2, k3, k4, k5, k6 = jax.random.split(key, 7)
    x = jax.random.normal(k_x, (B, Cin, H, W), jnp.float32)
    # deterministic synthetic parameters (shapes follow DRConv2d.__init__)
    w1 = jax.random.normal(k1, (R * R, Cin), jnp.float32) * 0.1            # 1x1 conv
    b1 = jax.random.normal(k2, (R * R,), jnp.float32) * 0.1
    w2 = jax.random.normal(k3, (R * Cin * Cout, R), jnp.float32) * 0.1     # grouped 1x1
    b2 = jax.random.normal(k4, (R * Cin * Cout,), jnp.float32) * 0.1
    wg = jax.random.normal(k5, (R, Cin, K, K), jnp.float32) * 0.1          # conv_guide
    bg = jax.random.normal(k6, (R,), jnp.float32) * 0.1
    params = (w1, b1, w2, b2, wg, bg)

    out, aux = drconv2d_forward(x, params, K=K, R=R, Cout=Cout,
                                stride=stride, padding=padding)
    out = jax.block_until_ready(out)

    xc_bf, filt6_bf, wg_bf, bg_bf, Ho, Wo = aux
    ref, guide = reference_drconv(xc_bf, filt6_bf, wg_bf, bg_bf,
                                  K=K, Ho=Ho, Wo=Wo, R=R, Cout=Cout, stride=stride)

    assert out.shape == (B, Cout, Ho, Wo)
    assert bool(jnp.all(jnp.isfinite(out)))

    # Tie-aware comparison: the region argmax is discrete, so only compare pixels
    # whose top-2 guide-score gap is clearly resolved (both paths use identical
    # bf16-rounded inputs, so any remaining delta is accumulation order only).
    gsorted = jnp.sort(guide, axis=-1)
    gap = gsorted[..., -1] - gsorted[..., -2]                              # (B,Ho,Wo)
    valid = (gap > 1e-4)[:, None, :, :]                                    # (B,1,Ho,Wo)
    err = jnp.where(valid, jnp.abs(out - ref), 0.0)
    assert float(jnp.max(err)) < 1e-3, float(jnp.max(err))
    assert float(jnp.mean(valid.astype(jnp.float32))) > 0.9

    print("KERNEL_OK")
</pallas_src>

<mosaic_0001>
module attributes {stable_mosaic.version = 11 : i64} {
  func.func @_drconv_kernel(%arg0: i32, %arg1: i32, %arg2: memref<1x80x48xbf16, #tpu.memory_space<vmem>>, %arg3: memref<1x48x256xbf16, #tpu.memory_space<vmem>>, %arg4: memref<1x8x256xf32, #tpu.memory_space<vmem>>) attributes {dimension_semantics = [#tpu.dimension_semantics<parallel>, #tpu.dimension_semantics<parallel>], iteration_bounds = array<i64: 2, 1>, scalar_prefetch = 0 : i64, scratch_operands = 0 : i64, tpu.core_type = #tpu.core_type<tc>, window_params = [{transform_indices = @transform_0, window_bounds = array<i64: 1, 80, 48>}, {transform_indices = @transform_1, window_bounds = array<i64: 1, 48, 256>}, {transform_indices = @transform_2, window_bounds = array<i64: 1, 8, 256>}]} {
    %c0 = arith.constant 0 : index
    %c0_0 = arith.constant 0 : index
    %c0_1 = arith.constant 0 : index
    %0 = vector.load %arg2[%c0, %c0_0, %c0_1] : memref<1x80x48xbf16, #tpu.memory_space<vmem>>, vector<1x80x48xbf16>
    %1 = vector.shape_cast %0 : vector<1x80x48xbf16> to vector<80x48xbf16>
    %c0_2 = arith.constant 0 : index
    %c0_3 = arith.constant 0 : index
    %c0_4 = arith.constant 0 : index
    %2 = vector.load %arg3[%c0_2, %c0_3, %c0_4] : memref<1x48x256xbf16, #tpu.memory_space<vmem>>, vector<1x48x256xbf16>
    %3 = vector.shape_cast %2 : vector<1x48x256xbf16> to vector<48x256xbf16>
    %cst = arith.constant dense<0.000000e+00> : vector<80x256xf32>
    %4 = tpu.matmul %1, %3, %cst {dimension_numbers = #tpu.dot_dimension_numbers<[1], [0], [0], [1], [0, 0, 1, 1], [], []>} : vector<80x48xbf16>, vector<48x256xbf16>, vector<80x256xf32> -> vector<80x256xf32>
    %5 = vector.extract_strided_slice %4 {offsets = [64, 0], sizes = [8, 256], strides = [1, 1]} : vector<80x256xf32> to vector<8x256xf32>
    %cst_5 = arith.constant dense<0xFF800000> : vector<256xf32>
    %6 = vector.multi_reduction <maximumf>, %5, %cst_5 [0] : vector<8x256xf32> to vector<256xf32>
    %7 = vector.shape_cast %6 : vector<256xf32> to vector<1x256xf32>
    %8 = tpu.iota {dimensions = array<i32: 0>} : vector<8x256xi32>
    %9 = vector.broadcast %7 : vector<1x256xf32> to vector<8x256xf32>
    %10 = arith.cmpf oge, %5, %9 : vector<8x256xf32>
    %c8_i32 = arith.constant 8 : i32
    %11 = vector.broadcast %c8_i32 : i32 to vector<8x256xi32>
    %12 = arith.select %10, %8, %11 : vector<8x256xi1>, vector<8x256xi32>
    %cst_6 = arith.constant dense<2147483647> : vector<256xi32>
    %13 = vector.multi_reduction <minsi>, %12, %cst_6 [0] : vector<8x256xi32> to vector<256xi32>
    %14 = vector.shape_cast %13 : vector<256xi32> to vector<1x256xi32>
    %cst_7 = arith.constant 0.000000e+00 : f32
    %15 = vector.broadcast %cst_7 : f32 to vector<8x256xf32>
    %16 = vector.extract_strided_slice %4 {offsets = [0, 0], sizes = [8, 256], strides = [1, 1]} : vector<80x256xf32> to vector<8x256xf32>
    %c0_i32 = arith.constant 0 : i32
    %17 = vector.broadcast %c0_i32 : i32 to vector<1x256xi32>
    %18 = arith.cmpi eq, %14, %17 : vector<1x256xi32>
    %cst_8 = arith.constant 0.000000e+00 : f32
    %19 = vector.shape_cast %18 : vector<1x256xi1> to vector<1x256xi1>
    %20 = vector.broadcast %19 : vector<1x256xi1> to vector<8x256xi1>
    %21 = vector.broadcast %cst_8 : f32 to vector<8x256xf32>
    %22 = arith.select %20, %16, %21 : vector<8x256xi1>, vector<8x256xf32>
    %23 = arith.addf %15, %22 : vector<8x256xf32>
    %24 = vector.extract_strided_slice %4 {offsets = [8, 0], sizes = [8, 256], strides = [1, 1]} : vector<80x256xf32> to vector<8x256xf32>
    %c1_i32 = arith.constant 1 : i32
    %25 = vector.broadcast %c1_i32 : i32 to vector<1x256xi32>
    %26 = arith.cmpi eq, %14, %25 : vector<1x256xi32>
    %cst_9 = arith.constant 0.000000e+00 : f32
    %27 = vector.shape_cast %26 : vector<1x256xi1> to vector<1x256xi1>
    %28 = vector.broadcast %27 : vector<1x256xi1> to vector<8x256xi1>
    %29 = vector.broadcast %cst_9 : f32 to vector<8x256xf32>
    %30 = arith.select %28, %24, %29 : vector<8x256xi1>, vector<8x256xf32>
    %31 = arith.addf %23, %30 : vector<8x256xf32>
    %32 = vector.extract_strided_slice %4 {offsets = [16, 0], sizes = [8, 256], strides = [1, 1]} : vector<80x256xf32> to vector<8x256xf32>
    %c2_i32 = arith.constant 2 : i32
    %33 = vector.broadcast %c2_i32 : i32 to vector<1x256xi32>
    %34 = arith.cmpi eq, %14, %33 : vector<1x256xi32>
    %cst_10 = arith.constant 0.000000e+00 : f32
    %35 = vector.shape_cast %34 : vector<1x256xi1> to vector<1x256xi1>
    %36 = vector.broadcast %35 : vector<1x256xi1> to vector<8x256xi1>
    %37 = vector.broadcast %cst_10 : f32 to vector<8x256xf32>
    %38 = arith.select %36, %32, %37 : vector<8x256xi1>, vector<8x256xf32>
    %39 = arith.addf %31, %38 : vector<8x256xf32>
    %40 = vector.extract_strided_slice %4 {offsets = [24, 0], sizes = [8, 256], strides = [1, 1]} : vector<80x256xf32> to vector<8x256xf32>
    %c3_i32 = arith.constant 3 : i32
    %41 = vector.broadcast %c3_i32 : i32 to vector<1x256xi32>
    %42 = arith.cmpi eq, %14, %41 : vector<1x256xi32>
    %cst_11 = arith.constant 0.000000e+00 : f32
    %43 = vector.shape_cast %42 : vector<1x256xi1> to vector<1x256xi1>
    %44 = vector.broadcast %43 : vector<1x256xi1> to vector<8x256xi1>
    %45 = vector.broadcast %cst_11 : f32 to vector<8x256xf32>
    %46 = arith.select %44, %40, %45 : vector<8x256xi1>, vector<8x256xf32>
    %47 = arith.addf %39, %46 : vector<8x256xf32>
    %48 = vector.extract_strided_slice %4 {offsets = [32, 0], sizes = [8, 256], strides = [1, 1]} : vector<80x256xf32> to vector<8x256xf32>
    %c4_i32 = arith.constant 4 : i32
    %49 = vector.broadcast %c4_i32 : i32 to vector<1x256xi32>
    %50 = arith.cmpi eq, %14, %49 : vector<1x256xi32>
    %cst_12 = arith.constant 0.000000e+00 : f32
    %51 = vector.shape_cast %50 : vector<1x256xi1> to vector<1x256xi1>
    %52 = vector.broadcast %51 : vector<1x256xi1> to vector<8x256xi1>
    %53 = vector.broadcast %cst_12 : f32 to vector<8x256xf32>
    %54 = arith.select %52, %48, %53 : vector<8x256xi1>, vector<8x256xf32>
    %55 = arith.addf %47, %54 : vector<8x256xf32>
    %56 = vector.extract_strided_slice %4 {offsets = [40, 0], sizes = [8, 256], strides = [1, 1]} : vector<80x256xf32> to vector<8x256xf32>
    %c5_i32 = arith.constant 5 : i32
    %57 = vector.broadcast %c5_i32 : i32 to vector<1x256xi32>
    %58 = arith.cmpi eq, %14, %57 : vector<1x256xi32>
    %cst_13 = arith.constant 0.000000e+00 : f32
    %59 = vector.shape_cast %58 : vector<1x256xi1> to vector<1x256xi1>
    %60 = vector.broadcast %59 : vector<1x256xi1> to vector<8x256xi1>
    %61 = vector.broadcast %cst_13 : f32 to vector<8x256xf32>
    %62 = arith.select %60, %56, %61 : vector<8x256xi1>, vector<8x256xf32>
    %63 = arith.addf %55, %62 : vector<8x256xf32>
    %64 = vector.extract_strided_slice %4 {offsets = [48, 0], sizes = [8, 256], strides = [1, 1]} : vector<80x256xf32> to vector<8x256xf32>
    %c6_i32 = arith.constant 6 : i32
    %65 = vector.broadcast %c6_i32 : i32 to vector<1x256xi32>
    %66 = arith.cmpi eq, %14, %65 : vector<1x256xi32>
    %cst_14 = arith.constant 0.000000e+00 : f32
    %67 = vector.shape_cast %66 : vector<1x256xi1> to vector<1x256xi1>
    %68 = vector.broadcast %67 : vector<1x256xi1> to vector<8x256xi1>
    %69 = vector.broadcast %cst_14 : f32 to vector<8x256xf32>
    %70 = arith.select %68, %64, %69 : vector<8x256xi1>, vector<8x256xf32>
    %71 = arith.addf %63, %70 : vector<8x256xf32>
    %72 = vector.extract_strided_slice %4 {offsets = [56, 0], sizes = [8, 256], strides = [1, 1]} : vector<80x256xf32> to vector<8x256xf32>
    %c7_i32 = arith.constant 7 : i32
    %73 = vector.broadcast %c7_i32 : i32 to vector<1x256xi32>
    %74 = arith.cmpi eq, %14, %73 : vector<1x256xi32>
    %cst_15 = arith.constant 0.000000e+00 : f32
    %75 = vector.shape_cast %74 : vector<1x256xi1> to vector<1x256xi1>
    %76 = vector.broadcast %75 : vector<1x256xi1> to vector<8x256xi1>
    %77 = vector.broadcast %cst_15 : f32 to vector<8x256xf32>
    %78 = arith.select %76, %72, %77 : vector<8x256xi1>, vector<8x256xf32>
    %79 = arith.addf %71, %78 : vector<8x256xf32>
    %80 = vector.shape_cast %79 : vector<8x256xf32> to vector<1x8x256xf32>
    %c0_16 = arith.constant 0 : index
    %c0_17 = arith.constant 0 : index
    %c0_18 = arith.constant 0 : index
    %81 = vector.load %arg4[%c0_16, %c0_17, %c0_18] : memref<1x8x256xf32, #tpu.memory_space<vmem>>, vector<1x8x256xf32>
    tpu.vector_store %arg4[%c0_16, %c0_17, %c0_18], %80 {strides = array<i32>} : memref<1x8x256xf32, #tpu.memory_space<vmem>>, vector<1x8x256xf32>,
    return
  }
  func.func @transform_0(%arg0: i32, %arg1: i32) -> (i32, i32, i32) {
    %c0_i32 = arith.constant 0 : i32
    %c0_i32_0 = arith.constant 0 : i32
    %c0_i32_1 = arith.constant 0 : i32
    return %arg0, %c0_i32, %c0_i32_0 : i32, i32, i32
  }
  func.func @transform_1(%arg0: i32, %arg1: i32) -> (i32, i32, i32) {
    %c0_i32 = arith.constant 0 : i32
    %c0_i32_0 = arith.constant 0 : i32
    return %arg0, %c0_i32, %arg1 : i32, i32, i32
  }
  func.func @transform_2(%arg0: i32, %arg1: i32) -> (i32, i32, i32) {
    %c0_i32 = arith.constant 0 : i32
    %c0_i32_0 = arith.constant 0 : i32
    return %arg0, %c0_i32, %arg1 : i32, i32, i32
  }
}

</mosaic_0001>

<bundles_post_ra>
// kernel: tpu_custom_call.1
= control target key start
LH: loop header
LB: loop body
LE: loop exit
PB: predicated region body
PF: predicated region fallthrough
CT: control target
= control target key end

     0   :  { %7 = vsyncpa [#allocation3], 0  ;;  %s913_s0 = inlined_call_operand.vmem [shape: bf16[2,80,48], index: 0, kind: input, shape index: {}]   ;;  %s914_s1 = inlined_call_operand.vmem [shape: bf16[2,48,256], index: 1, kind: input, shape index: {}]   ;;  %s915_s2 = inlined_call_operand.hbm [shape: f32[2,8,256], index: 2, kind: output, shape index: {}]  }
   0x1   :  { %9 = vsyncpa [#allocation3 + $0x1], 0  ;;  %s788_s9 = smov 0   ;;  %s790_s10 = smov 0  }
   0x2   :  { %s792_s11 = smov 0   ;;  %s794_s12 = smov 0  }
   0x3   :  { %s796_s13 = smov 0   ;;  %s798_s14 = smov 0  }
   0x4 LB: > { %s585_s15 = sadd.s32 4294967295, %s769_s14   ;;  %s586_s16 = sadd.s32 4294967294, %s769_s14   ;;  %s769_s14 = sphi %s798_s14, %s15_s14   ;;  %s765_s13 = sphi %s796_s13, %s922_s13   ;;  %s761_s12 = sphi %s794_s12, %s921_s12   ;;  %s757_s11 = sphi %s792_s11, %s920_s11   ;;  %s753_s10 = sphi %s790_s10, %s919_s10   ;;  %s749_s9 = sphi %s788_s9, %s918_s9  }
   0x5   : > { %s27_s17 = sadd.s32 1, %s765_s13  ;;  %s90_s18 = sadd.s32 1, %s757_s11 }
   0x6   : > { %p29_p0 = scmp.ge.s32.totalorder %s27_s17, 2  ;;  %p100_p1 = scmp.ne.s32.totalorder %s757_s11, %s753_s10 }
   0x7   : > { %p101_p2 = scmp.eq.s32.totalorder %s585_s15, 1  ;;  %p106_p3 = scmp.ne.s32.totalorder %s753_s10, %s749_s9 }
   0x8   : > { %s924_s17 = smov (%p29_p0, %s27_s17), 0  ;;  %p107_p5 = scmp.eq.s32.totalorder %s586_s16, 1 }
   0x9   : > { %p828_p4 = por %p101_p2, %p100_p1  ;;  %s85_s20 = ssub.s32 %s765_s13, %s924_s17 }
   0xa   : > { %p589_p6 = scmp.ge.s32.totalorder %s769_s14, 1  ;;  %p88_p7 = scmp.eq.s32.totalorder %s85_s20, 0 }
   0xb   : > { %p835_p8 = por %p107_p5, %p106_p3  ;;  %p146_p9 = scmp.lt.s32.totalorder %s769_s14, 3 }
   0xc   : > { %s841_s22 = scalar_select %p88_p7, %s757_s11, %s90_s18  }
   0xd   : > { %p147_p10 = pnand %p589_p6, %p146_p9 }
   0xe   : > { %p177_p11 = scmp.lt.s32.totalorder (!%p147_p10), %s761_s12, 1  ;;  %s174_s4 = sand.u32 (!%p147_p10), 1, %s753_s10  }
   0xf   : > { %150 = sbr.rel (%p147_p10) target bundleno = 297 (0x129), region = 28  ;;  %s590_s5 = sshll.u32 (!%p147_p10), %s174_s4, 4 }
  0x10   : > { %s614_s6 = sshll.u32 (!%p147_p10), %s761_s12, 8  ;;  %s176_s7 = scalar_lea.vmem (!%p147_p10), [#allocation2], %s590_s5 }
  0x11   : > { %s497_s8 = sshll.u32 (!%p147_p10), %s176_s7, 4  ;;  %s495_s18 = scalar_lea.hbm (!%p147_p10), %s915_s2, %s614_s6  ;;  %s498_s8 = int_to_ptr.vmem [resolvable:$true] %s497_s8 }
  0x12   : > { %s481_s20 = scalar_lea.sflag (!%p147_p10), [#allocation3], %s174_s4 }
  0x14   : > { %v771_v0 = vmov 0   ;;  %s178_s23 = scalar_select %p177_p11, %s761_s12, 1  ;;  %vm265_vm0 = vcmask 392192   ;;  %v374_v28 = vlaneseq }
  0x15   : > { %343 = vmatprep.mubr.bf16.mxu1 %v771_v0  ;;  %313 = vmatprep.mubr.bf16.mxu0 %v771_v0  ;;  %s772_s12 = smov [#allocation2]  }
  0x16   : > { %s621_s24 = smul.u32 40, %s178_s23  ;;  %v375_v35 = vshrl.u32 %v374_v28, 7 }
  0x17   : > { %s622_s25 = smul.u32 48, %s178_s23  ;;  %s693_s23 = scalar_lea.vmem %s498_s8, 256 }
  0x18   : > { %s848_s28 = scalar_lea.vmem %s913_s0, %s621_s24  ;;  %p694_p12 = scmp.ne.s32.totalorder %s498_s8, %s693_s23 }
  0x19   : > { %s190_s3 = scalar_lea.vmem %s914_s1, %s622_s25  ;;  %v688_v7 = vld [vmem:[%s848_s28 + $0x18] sm:$0xff]   ;;  %v690_v8 = vld [vmem:[%s848_s28] sm:$0xff]   ;;  %v691_v10 = vld [vmem:[%s848_s28 + $0x8] sm:$0xff]   ;;  %s697_s24 = sshll.u32 %s772_s12, 4  ;;  %s698_s24 = int_to_ptr.vmem [resolvable:$false] %s697_s24 }
  0x1a   : > { %v679_v1 = vld [vmem:[%s190_s3 + $0x24] ss:$8 sps:$4 sm:$0xff]   ;;  %v681_v2 = vld [vmem:[%s190_s3 + $0x20] ss:$8 sps:$4 sm:$0xff]   ;;  %v682_v3 = vld [vmem:[%s190_s3 + $0x14] ss:$8 sps:$4 sm:$0xff]   ;;  %p695_p13 = pnand %p694_p12, %p828_p4  ;;  %p700_p1 = scmp.lt.s32.totalorder %s498_s8, %s698_s24 }
  0x1b   : > { %615 = vmatprep.subr.bf16.mxu1 %v679_v1  ;;  %291 = vmatprep.subr.bf16.mxu0 %v679_v1  ;;  %v684_v4 = vld [vmem:[%s190_s3 + $0x10] ss:$8 sps:$4 sm:$0xff]   ;;  %v685_v5 = vld [vmem:[%s190_s3 + $0x4] ss:$8 sps:$4 sm:$0xff]   ;;  %v687_v6 = vld [vmem:[%s190_s3] ss:$8 sps:$4 sm:$0xff]  }
  0x1c   : > { %618 = vmatpush1.bf16.msra.mxu1 %v681_v2  ;;  %292 = vmatpush1.bf16.msra.mxu0 %v681_v2  ;;  %v689_v9 = vld [vmem:[%s848_s28 + $0x20] sm:$0xff]   ;;  %v692_v11 = vld [vmem:[%s848_s28 + $0x10] sm:$0xff]   ;;  %p696_p0 = pneg %p695_p13  ;;  %s699_s25 = scalar_lea.vmem %s698_s24, 512 }
  0x1d   : > { %616 = vmatprep.subr.bf16.mxu1 %v682_v3  ;;  %293 = vmatprep.subr.bf16.mxu0 %v682_v3  ;;  %p701_p2 = scmp.lt.s32.totalorder %s699_s25, %s693_s23 }
  0x1f   : > { %p702_p3 = por %p701_p2, %p700_p1 }
  0x20   : > { %619 = vmatpush1.bf16.msra.mxu1 %v684_v4  ;;  %294 = vmatpush1.bf16.msra.mxu0 %v684_v4 }
  0x21   : > { %617 = vmatprep.subr.bf16.mxu1 %v685_v5  ;;  %295 = vmatprep.subr.bf16.mxu0 %v685_v5  ;;  %p703_p5 = pnand %p702_p3, %p696_p0 }
  0x24   : > { %620 = vmatpush1.bf16.msra.mxu1 %v687_v6  ;;  %296 = vmatpush1.bf16.msra.mxu0 %v687_v6 }
  0x27   : > { %607 = vmatmul.mubr.msk.bf16.vlgmr.msra.gmra.mxu1 %vm265_vm0, %v688_v7  ;;  %604 = vmatmul.mubr.msk.bf16.vlgmr.msra.gmra.mxu0 %vm265_vm0, %v690_v8 }
  0x28   : > { %353 = vmatprep.mubr.bf16.mxu1 %v771_v0  ;;  %323 = vmatprep.mubr.bf16.mxu0 %v771_v0 }
  0x2f   : > { %608 = vmatmul.mubr.msk.bf16.gmra.mxu1 %vm265_vm0, %v689_v9  ;;  %605 = vmatmul.mubr.msk.bf16.gmra.mxu0 %vm265_vm0, %v691_v10 }
  0x30   : > { %333 = vmatprep.mubr.bf16.mxu0 %v771_v0 }
  0x37   : > { %606 = vmatmul.mubr.msk.bf16.gmra.mxu0 %vm265_vm0, %v692_v11 }
  0xe7   : > { %v858_v12 = vpop.f32.mrf.mxu1  ;;  %v315_v13 = vpop.f32.mrf.mxu0 }
  0xe9   : > { %v860_v14 = vpop.f32.mrf.mxu1  ;;  %v317_v15 = vpop.f32.mrf.mxu0 }
  0xeb   : > { %v862_v16 = vpop.f32.mrf.mxu1  ;;  %v319_v18 = vpop.f32.mrf.mxu0 }
  0xed   : > { %v864_v17 = vpop.f32.mrf.mxu1  ;;  %v321_v24 = vpop.f32.mrf.mxu0 }
  0xef   : > { %v355_v19 = vpop.f32.mrf.mxu1  ;;  %v325_v32 = vpop.f32.mrf.mxu0 }
  0xf0   : > { %v362_v20 = vrot.slane %v355_v19, 4 }
  0xf1   : > { %v357_v21 = vpop.f32.mrf.mxu1  ;;  %v327_v38 = vpop.f32.mrf.mxu0 }
  0xf2   : > { %v363_v22 = vmax.f32 %v355_v19, %v362_v20  ;;  %v368_v23 = vrot.slane %v357_v21, 4 }
  0xf3   : > { %v359_v25 = vpop.f32.mrf.mxu1  ;;  %v329_v42 = vpop.f32.mrf.mxu0 }
  0xf4   : > { %v364_v26 = vrot.slane %v363_v22, 2  ;;  %v369_v27 = vmax.f32 %v357_v21, %v368_v23 }
  0xf5   : > { %v360_v29 = vpop.f32.mrf.mxu1  ;;  %v331_v47 = vpop.f32.mrf.mxu0 }
  0xf6   : > { %v365_v30 = vmax.f32 %v363_v22, %v364_v26  ;;  %v370_v31 = vrot.slane %v369_v27, 2 }
  0xf7   : > { %v335_v52 = vpop.f32.mrf.mxu0 }
  0xf8   : > { %v366_v33 = vrot.slane %v365_v30, 1  ;;  %v371_v34 = vmax.f32 %v369_v27, %v370_v31 }
  0xf9   : > { %v337_v56 = vpop.f32.mrf.mxu0 }
  0xfa   : > { %v367_v36 = vmax.f32 %v365_v30, %v366_v33  ;;  %v372_v37 = vrot.slane %v371_v34, 1 }
  0xfb   : > { %v339_v2 = vpop.f32.mrf.mxu0 }
  0xfc   : > { %vm376_vm1 = vcmp.ge.f32.partialorder %v355_v19, %v367_v36  ;;  %v373_v39 = vmax.f32 %v371_v34, %v372_v37 }
  0xfd   : > { %v378_v40 = vsel %vm376_vm1, %v375_v35, 8  ;;  %v341_v11 = vpop.f32.mrf.mxu0 }
  0xfe   : > { %v380_v41 = vrot.slane %v378_v40, 4  ;;  %vm377_vm2 = vcmp.ge.f32.partialorder %v357_v21, %v373_v39 }
  0xff   : > { %v379_v43 = vsel %vm377_vm2, %v375_v35, 8 }
 0x100   : > { %vm381_vm3 = vcmp.lt.s32.totalorder %v378_v40, %v380_v41  ;;  %v389_v44 = vrot.slane %v379_v43, 4 }
 0x101   : > { %v382_v45 = vsel %vm381_vm3, %v378_v40, %v380_v41 }
 0x102   : > { %v383_v46 = vrot.slane %v382_v45, 2  ;;  %vm390_vm4 = vcmp.lt.s32.totalorder %v379_v43, %v389_v44 }
 0x103   : > { %v391_v48 = vsel %vm390_vm4, %v379_v43, %v389_v44 }
 0x104   : > { %vm384_vm5 = vcmp.lt.s32.totalorder %v382_v45, %v383_v46  ;;  %v392_v49 = vrot.slane %v391_v48, 2 }
 0x105   : > { %v385_v50 = vsel %vm384_vm5, %v382_v45, %v383_v46 }
 0x106   : > { %v386_v51 = vrot.slane %v385_v50, 1  ;;  %vm393_vm6 = vcmp.lt.s32.totalorder %v391_v48, %v392_v49 }
 0x107   : > { %v394_v53 = vsel %vm393_vm6, %v391_v48, %v392_v49 }
 0x108   : > { %vm387_vm7 = vcmp.lt.s32.totalorder %v385_v50, %v386_v51  ;;  %v395_v54 = vrot.slane %v394_v53, 1 }
 0x109   : > { %v388_v55 = vsel %vm387_vm7, %v385_v50, %v386_v51 }
 0x10a   : > { %vm396_vm8 = vcmp.lt.s32.totalorder %v394_v53, %v395_v54  ;;  %vm398_vm9 = vcmp.eq.s32.totalorder %v388_v55, 0  ;;  %vm408_vm10 = vcmp.eq.s32.totalorder %v388_v55, 1  ;;  %vm418_vm11 = vcmp.eq.s32.totalorder %v388_v55, 2 }
 0x10b   : > { %v397_v57 = vsel %vm396_vm8, %v394_v53, %v395_v54  ;;  %v404_v58 = vsel %vm398_vm9, %v315_v13, 0.0  ;;  %v414_v59 = vsel %vm408_vm10, %v319_v18, 0.0  ;;  %v424_v63 = vsel %vm418_vm11, %v325_v32, 0.0 }
 0x10c   : > { %vm399_vm12 = vcmp.eq.s32.totalorder %v397_v57, 0  ;;  %v416_v60 = vadd.f32 %v414_v59, %v404_v58  ;;  %vm409_vm13 = vcmp.eq.s32.totalorder %v397_v57, 1  ;;  %vm419_vm14 = vcmp.eq.s32.totalorder %v397_v57, 2 }
 0x10d   : > { %v405_v61 = vsel %vm399_vm12, %v317_v15, 0.0  ;;  %v415_v62 = vsel %vm409_vm13, %v321_v24, 0.0  ;;  %vm428_vm15 = vcmp.eq.s32.totalorder %v388_v55, 3  ;;  %vm429_vm0 = vcmp.eq.s32.totalorder %v397_v57, 3 }
 0x10e   : > { %v417_v0 = vadd.f32 %v415_v62, %v405_v61  ;;  %v426_v1 = vadd.f32 %v424_v63, %v416_v60  ;;  %v425_v3 = vsel %vm419_vm14, %v327_v38, 0.0  ;;  %v434_v4 = vsel %vm428_vm15, %v329_v42, 0.0 }
 0x10f   : > { %vm438_vm1 = vcmp.eq.s32.totalorder %v388_v55, 4  ;;  %vm439_vm2 = vcmp.eq.s32.totalorder %v397_v57, 4  ;;  %vm448_vm3 = vcmp.eq.s32.totalorder %v388_v55, 5  ;;  %v435_v7 = vsel %vm429_vm0, %v331_v47, 0.0 }
 0x110   : > { %v427_v5 = vadd.f32 %v425_v3, %v417_v0  ;;  %v436_v6 = vadd.f32 %v434_v4, %v426_v1  ;;  %v444_v8 = vsel %vm438_vm1, %v335_v52, 0.0  ;;  %vm458_vm4 = vcmp.eq.s32.totalorder %v388_v55, 6 }
 0x111   : > { %vm449_vm5 = vcmp.eq.s32.totalorder %v397_v57, 5  ;;  %v445_v13 = vsel %vm439_vm2, %v337_v56, 0.0  ;;  %v454_v15 = vsel %vm448_vm3, %v339_v2, 0.0  ;;  %vm468_vm6 = vcmp.eq.s32.totalorder %v388_v55, 7 }
 0x112   : > { %v437_v9 = vadd.f32 %v435_v7, %v427_v5  ;;  %v446_v10 = vadd.f32 %v444_v8, %v436_v6  ;;  %vm459_vm7 = vcmp.eq.s32.totalorder %v397_v57, 6  ;;  %v464_v20 = vsel %vm458_vm4, %v858_v12, 0.0 }
 0x113   : > { %v455_v21 = vsel %vm449_vm5, %v341_v11, 0.0  ;;  %vm469_vm8 = vcmp.eq.s32.totalorder %v397_v57, 7  ;;  %v474_v24 = vsel %vm468_vm6, %v862_v16, 0.0  ;;  %v465_v25 = vsel %vm459_vm7, %v860_v14, 0.0 }
 0x114   : > { %v447_v18 = vadd.f32 %v445_v13, %v437_v9  ;;  %v456_v19 = vadd.f32 %v454_v15, %v446_v10  ;;  %v475_v28 = vsel %vm469_vm8, %v864_v17, 0.0 }
 0x116   : > { %v466_v22 = vadd.f32 %v464_v20, %v456_v19  ;;  %v457_v23 = vadd.f32 %v455_v21, %v447_v18 }
 0x118   : > { %v476_v26 = vadd.f32 %v474_v24, %v466_v22  ;;  %v467_v27 = vadd.f32 %v465_v25, %v457_v23 }
 0x11a   : > { %v477_v29 = vadd.f32 %v475_v28, %v467_v27  ;;  %478 = vst [vmem:[%s176_s7] sm:$0xff] %v476_v26 }
 0x11c   : > { %479 = vst [vmem:[%s176_s7 + $0x8] sm:$0xff] %v477_v29 }
 0x11d   : > { %706 = shalt.err (!%p703_p5)
}
 0x11e   : > { %s707_s26 = scalar_lea.hbm %s495_s18, 256  ;;  %s711_s29 = scalar_lea.hbm %s915_s2, 512 }
 0x11f   : > { %p708_p6 = scmp.ne.s32.totalorder %s495_s18, %s707_s26  ;;  %p712_p10 = scmp.lt.s32.totalorder %s495_s18, %s915_s2 }
 0x120   : > { %p713_p11 = scmp.lt.s32.totalorder %s711_s29, %s707_s26 }
 0x121   : > { %p709_p7 = pnand %p708_p6, %p828_p4 }
 0x122   : > { %p714_p12 = por %p713_p11, %p712_p10 }
 0x123   : > { %p710_p9 = pneg %p709_p7 }
 0x125   : > { %p715_p13 = pnand %p714_p12, %p710_p9 }
 0x127   : > { %718 = shalt.err (!%p715_p13)
}
 0x128   : > { %623 = dma.vmem_to_hbm [thread:$0]  (%p828_p4), %s498_s8, 256, %s495_s18, %s481_s20  }
 0x129 PF: > { %p629_p0 = scmp.ge.s32.totalorder %s769_s14, 2  ;;  %s509_s4 = sand.u32 1, %s749_s9  }
 0x12a   : > { %s510_s5 = scalar_lea.sflag [#allocation3], %s509_s4 }
 0x12b   : > { %p626_p1 = pnand %p629_p0, %p835_p8 }
 0x12d   : > { %p627_p2 = pneg %p626_p1 }
 0x12f   : > { %744 = dma.done.wait (%p627_p2), %s510_s5, 256  }
 0x130   : > { %746 = vsyncadd (%p627_p2), %s510_s5, 4294967040  ;;  %s15_s14 = sadd.s32 1, %s769_s14   ;;  %s918_s9 = smov %s753_s10 }
 0x131   : > { %p12_p3 = scmp.ge.s32.totalorder %s15_s14, 4   ;;  %s919_s10 = smov %s757_s11 }
 0x132   : > { %s920_s11 = smov %s841_s22  ;;  %s921_s12 = smov %s765_s13 }
 0x133   : > { %s922_s13 = smov %s924_s17  ;;  %14 = sbr.rel (!%p12_p3) target bundleno = 4 (0x4), region = 66 }
 0x138   :  { %515 = vsyncpa [#allocation3], 1 }
 0x139   :  { %517 = vsyncpa [#allocation3 + $0x1], 1 }

</bundles_post_ra>
